<compile_context>
chip_gen: v5e
topology: v5e:2x2
jax: 0.10.0
libtpu: 0.0.40
codegen_flags: <defaults>
</compile_context>

<pallas_src>
import math

import jax
import jax.numpy as jnp
from jax.experimental import pallas as pl
from jax.experimental.pallas import tpu as pltpu

# num_actuators comes from the MuJoCo model in the original script; fixed here.
NUM_ACTUATORS = 32            # nu
HIDDEN = NUM_ACTUATORS // 2   # 16
OUT = NUM_ACTUATORS // 4      # 8


def sensor_encoder_kernel(x_ref, w1_ref, b1_ref, w2_ref, b2_ref, o_ref):
    # x_ref:  [nu,   TILE_B]  bf16  (batch in lanes)
    # w1_ref: [nu/2, nu]      bf16  (PyTorch [out, in] layout)
    # b1_ref: [nu/2, 1]       f32
    # w2_ref: [nu/4, nu/2]    bf16
    # b2_ref: [nu/4, 1]       f32
    # o_ref:  [nu/4, TILE_B]  f32   (lane-dense output tile)
    x = x_ref[...]
    h = jnp.dot(w1_ref[...], x, preferred_element_type=jnp.float32) + b1_ref[...]
    h = jnp.maximum(h, 0.0)                                   # ReLU in f32
    y = jnp.dot(w2_ref[...], h.astype(w2_ref.dtype),
                preferred_element_type=jnp.float32) + b2_ref[...]
    o_ref[...] = y.astype(o_ref.dtype)


def sensor_encoder(x, w1, b1, w2, b2, *, tile_b=1024):
    """x: [B, nu]; w1: [nu/2, nu]; b1: [nu/2]; w2: [nu/4, nu/2]; b2: [nu/4].

    Weights follow the PyTorch nn.Linear [out, in] convention.  Returns [B, nu/4].
    """
    B, F = x.shape
    H = w1.shape[0]
    O = w2.shape[0]

    # Batch tile: a multiple of 128 for lane density when B is large; for small B a
    # single full-extent block (always layout-legal).
    tb = min(tile_b, B)
    num_tiles = pl.cdiv(B, tb)
    b_pad = num_tiles * tb

    # Lane-dense layout: batch -> lanes.  bf16 inputs halve HBM traffic.
    x_t = jnp.swapaxes(x, 0, 1).astype(jnp.bfloat16)          # [nu, B]
    if b_pad != B:
        x_t = jnp.pad(x_t, ((0, 0), (0, b_pad - B)))

    w1_b = w1.astype(jnp.bfloat16)
    w2_b = w2.astype(jnp.bfloat16)
    b1_c = b1.reshape(H, 1).astype(jnp.float32)
    b2_c = b2.reshape(O, 1).astype(jnp.float32)

    bytes_accessed = (x_t.size * 2 + O * b_pad * 4
                      + w1_b.size * 2 + w2_b.size * 2 + (H + O) * 4)
    cost = pl.CostEstimate(flops=2 * b_pad * (F * H + H * O),
                           transcendentals=0,
                           bytes_accessed=bytes_accessed)

    out_t = pl.pallas_call(
        sensor_encoder_kernel,
        out_shape=jax.ShapeDtypeStruct((O, b_pad), jnp.float32),
        grid_spec=pltpu.PrefetchScalarGridSpec(
            num_scalar_prefetch=0,
            grid=(num_tiles,),
            in_specs=[
                pl.BlockSpec((F, tb), lambda i: (0, i)),      # x tiled over batch
                pl.BlockSpec((H, F), lambda i: (0, 0)),       # weights stay VMEM-resident
                pl.BlockSpec((H, 1), lambda i: (0, 0)),
                pl.BlockSpec((O, H), lambda i: (0, 0)),
                pl.BlockSpec((O, 1), lambda i: (0, 0)),
            ],
            out_specs=pl.BlockSpec((O, tb), lambda i: (0, i)),
        ),
        compiler_params=pltpu.CompilerParams(
            dimension_semantics=("parallel",)),               # shard batch across TCs (v7x)
        cost_estimate=cost,
    )(x_t, w1_b, b1_c, w2_b, b2_c)

    return jnp.swapaxes(out_t[:, :B], 0, 1).astype(x.dtype)   # [B, nu/4]


def reference_f32(x, w1, b1, w2, b2):
    h = jnp.maximum(x @ w1.T + b1, 0.0)
    return h @ w2.T + b2


def reference_bf16(x, w1, b1, w2, b2):
    # Mirrors the kernel's quantization: bf16 operands, f32 accumulate, f32 bias/ReLU.
    f32 = jnp.float32
    xb = x.astype(jnp.bfloat16).astype(f32)
    w1b = w1.astype(jnp.bfloat16).astype(f32)
    w2b = w2.astype(jnp.bfloat16).astype(f32)
    h = jnp.maximum(xb @ w1b.T + b1.astype(f32), 0.0)
    hb = h.astype(jnp.bfloat16).astype(f32)
    return hb @ w2b.T + b2.astype(f32)


if __name__ == "__main__":
    key = jax.random.PRNGKey(0)
    kx, kw1, kb1, kw2, kb2, kx2 = jax.random.split(key, 6)

    # PyTorch nn.Linear-style init (kaiming-uniform weight, uniform bias), [out, in].
    bound1 = 1.0 / math.sqrt(NUM_ACTUATORS)
    bound2 = 1.0 / math.sqrt(HIDDEN)
    w1 = jax.random.uniform(kw1, (HIDDEN, NUM_ACTUATORS), jnp.float32, -bound1, bound1)
    b1 = jax.random.uniform(kb1, (HIDDEN,), jnp.float32, -bound1, bound1)
    w2 = jax.random.uniform(kw2, (OUT, HIDDEN), jnp.float32, -bound2, bound2)
    b2 = jax.random.uniform(kb2, (OUT,), jnp.float32, -bound2, bound2)

    # Small-batch case (single full-extent block).
    B = 2
    x = jax.random.normal(kx, (B, NUM_ACTUATORS), jnp.float32)
    out = sensor_encoder(x, w1, b1, w2, b2)
    jax.block_until_ready(out)
    assert out.shape == (B, OUT)
    assert jnp.allclose(out, reference_bf16(x, w1, b1, w2, b2), atol=5e-3, rtol=5e-3)
    assert jnp.allclose(out, reference_f32(x, w1, b1, w2, b2), atol=5e-2, rtol=5e-2)

    # Larger batch exercising the batch grid, VMEM-resident weights, and padding path.
    B2 = 300
    x2 = jax.random.normal(kx2, (B2, NUM_ACTUATORS), jnp.float32)
    out2 = sensor_encoder(x2, w1, b1, w2, b2, tile_b=128)
    jax.block_until_ready(out2)
    assert out2.shape == (B2, OUT)
    assert jnp.allclose(out2, reference_bf16(x2, w1, b1, w2, b2), atol=5e-3, rtol=5e-3)
    assert jnp.allclose(out2, reference_f32(x2, w1, b1, w2, b2), atol=5e-2, rtol=5e-2)

    print("KERNEL_OK")
</pallas_src>

<mosaic_0001>
module attributes {stable_mosaic.version = 11 : i64} {
  func.func @sensor_encoder_kernel(%arg0: i32, %arg1: memref<32x2xbf16, #tpu.memory_space<vmem>>, %arg2: memref<16x32xbf16, #tpu.memory_space<vmem>>, %arg3: memref<16x1xf32, #tpu.memory_space<vmem>>, %arg4: memref<8x16xbf16, #tpu.memory_space<vmem>>, %arg5: memref<8x1xf32, #tpu.memory_space<vmem>>, %arg6: memref<8x2xf32, #tpu.memory_space<vmem>>) attributes {dimension_semantics = [#tpu.dimension_semantics<parallel>], iteration_bounds = array<i64: 1>, scalar_prefetch = 0 : i64, scratch_operands = 0 : i64, tpu.core_type = #tpu.core_type<tc>, window_params = [{transform_indices = @transform_0, window_bounds = array<i64: 32, 2>}, {pipeline_mode = #tpu.pipeline_mode<synchronous>, transform_indices = @transform_1, window_bounds = array<i64: 16, 32>}, {pipeline_mode = #tpu.pipeline_mode<synchronous>, transform_indices = @transform_2, window_bounds = array<i64: 16, 1>}, {pipeline_mode = #tpu.pipeline_mode<synchronous>, transform_indices = @transform_3, window_bounds = array<i64: 8, 16>}, {pipeline_mode = #tpu.pipeline_mode<synchronous>, transform_indices = @transform_4, window_bounds = array<i64: 8, 1>}, {transform_indices = @transform_5, window_bounds = array<i64: 8, 2>}]} {
    %c0 = arith.constant 0 : index
    %c0_0 = arith.constant 0 : index
    %0 = vector.load %arg1[%c0, %c0_0] : memref<32x2xbf16, #tpu.memory_space<vmem>>, vector<32x2xbf16>
    %c0_1 = arith.constant 0 : index
    %c0_2 = arith.constant 0 : index
    %1 = vector.load %arg2[%c0_1, %c0_2] : memref<16x32xbf16, #tpu.memory_space<vmem>>, vector<16x32xbf16>
    %cst = arith.constant dense<0.000000e+00> : vector<16x2xf32>
    %2 = tpu.matmul %1, %0, %cst {dimension_numbers = #tpu.dot_dimension_numbers<[1], [0], [0], [1], [0, 0, 1, 1], [], []>} : vector<16x32xbf16>, vector<32x2xbf16>, vector<16x2xf32> -> vector<16x2xf32>
    %c0_3 = arith.constant 0 : index
    %c0_4 = arith.constant 0 : index
    %3 = vector.load %arg3[%c0_3, %c0_4] : memref<16x1xf32, #tpu.memory_space<vmem>>, vector<16x1xf32>
    %4 = vector.broadcast %3 : vector<16x1xf32> to vector<16x2xf32>
    %5 = arith.addf %2, %4 : vector<16x2xf32>
    %cst_5 = arith.constant 0.000000e+00 : f32
    %6 = vector.broadcast %cst_5 : f32 to vector<16x2xf32>
    %7 = arith.maximumf %5, %6 : vector<16x2xf32>
    %c0_6 = arith.constant 0 : index
    %c0_7 = arith.constant 0 : index
    %8 = vector.load %arg4[%c0_6, %c0_7] : memref<8x16xbf16, #tpu.memory_space<vmem>>, vector<8x16xbf16>
    %9 = arith.truncf %7 : vector<16x2xf32> to vector<16x2xbf16>
    %cst_8 = arith.constant dense<0.000000e+00> : vector<8x2xf32>
    %10 = tpu.matmul %8, %9, %cst_8 {dimension_numbers = #tpu.dot_dimension_numbers<[1], [0], [0], [1], [0, 0, 1, 1], [], []>} : vector<8x16xbf16>, vector<16x2xbf16>, vector<8x2xf32> -> vector<8x2xf32>
    %c0_9 = arith.constant 0 : index
    %c0_10 = arith.constant 0 : index
    %11 = vector.load %arg5[%c0_9, %c0_10] : memref<8x1xf32, #tpu.memory_space<vmem>>, vector<8x1xf32>
    %12 = vector.broadcast %11 : vector<8x1xf32> to vector<8x2xf32>
    %13 = arith.addf %10, %12 : vector<8x2xf32>
    %c0_11 = arith.constant 0 : index
    %c0_12 = arith.constant 0 : index
    %14 = vector.load %arg6[%c0_11, %c0_12] : memref<8x2xf32, #tpu.memory_space<vmem>>, vector<8x2xf32>
    tpu.vector_store %arg6[%c0_11, %c0_12], %13 {strides = array<i32>} : memref<8x2xf32, #tpu.memory_space<vmem>>, vector<8x2xf32>,
    return
  }
  func.func @transform_0(%arg0: i32) -> (i32, i32) {
    %c0_i32 = arith.constant 0 : i32
    %c0_i32_0 = arith.constant 0 : i32
    return %c0_i32, %arg0 : i32, i32
  }
  func.func @transform_1(%arg0: i32) -> (i32, i32) {
    %c0_i32 = arith.constant 0 : i32
    %c0_i32_0 = arith.constant 0 : i32
    %c0_i32_1 = arith.constant 0 : i32
    return %c0_i32, %c0_i32_0 : i32, i32
  }
  func.func @transform_2(%arg0: i32) -> (i32, i32) {
    %c0_i32 = arith.constant 0 : i32
    %c0_i32_0 = arith.constant 0 : i32
    %c0_i32_1 = arith.constant 0 : i32
    return %c0_i32, %c0_i32_0 : i32, i32
  }
  func.func @transform_3(%arg0: i32) -> (i32, i32) {
    %c0_i32 = arith.constant 0 : i32
    %c0_i32_0 = arith.constant 0 : i32
    %c0_i32_1 = arith.constant 0 : i32
    return %c0_i32, %c0_i32_0 : i32, i32
  }
  func.func @transform_4(%arg0: i32) -> (i32, i32) {
    %c0_i32 = arith.constant 0 : i32
    %c0_i32_0 = arith.constant 0 : i32
    %c0_i32_1 = arith.constant 0 : i32
    return %c0_i32, %c0_i32_0 : i32, i32
  }
  func.func @transform_5(%arg0: i32) -> (i32, i32) {
    %c0_i32 = arith.constant 0 : i32
    %c0_i32_0 = arith.constant 0 : i32
    return %c0_i32, %arg0 : i32, i32
  }
}

</mosaic_0001>

<bundles_post_ra>
// kernel: tpu_custom_call.1
= control target key start
LH: loop header
LB: loop body
LE: loop exit
PB: predicated region body
PF: predicated region fallthrough
CT: control target
= control target key end

     0   :  { %v127_v1 = vmov 0   ;;  %vm56_vm0 = vcmask 261120   ;;  %vm84_vm1 = vcmask 130048   ;;  %vm101_vm2 = vcmask 15360   ;;  %s182_s0 = inlined_call_operand.vmem [shape: bf16[32,2], index: 0, kind: input, shape index: {}]   ;;  %s183_s2 = inlined_call_operand.vmem [shape: f32[16,1], index: 2, kind: input, shape index: {}]   ;;  %s184_s1 = inlined_call_operand.vmem [shape: bf16[16,32], index: 1, kind: input, shape index: {}]   ;;  %s185_s4 = inlined_call_operand.vmem [shape: f32[8,1], index: 4, kind: input, shape index: {}]   ;;  %s186_s3 = inlined_call_operand.vmem [shape: bf16[8,16], index: 3, kind: input, shape index: {}]   ;;  %s187_s5 = inlined_call_operand.vmem [shape: f32[8,2], index: 5, kind: output, shape index: {}]  }
   0x1   :  { %v122_v0 = vld [vmem:[%s182_s0 + $0x8] sm:$0xff]  ;;  %125 = vset.pattern.permute.xlu0 %v127_v1  ;;  %126 = vset.pattern.permute.xlu1 %v127_v1  ;;  %v27_v2 = vld [vmem:[%s183_s2] sm:$0xff] }
   0x2   :  { %66 = vmatpush.bf16.msra.mxu0 %v122_v0  ;;  %v121_v3 = vld [vmem:[%s182_s0] sm:$0xff]  ;;  %31 = vperm.xlu0 %125, %v27_v2   ;;  %v28_v5 = vld [vmem:[%s183_s2 + $0x8] sm:$0xff] }
   0x3   :  { %v123_v4 = vld [vmem:[%s184_s1] sm:$0xff] }
   0x4   :  { %v78_v6 = vld [vmem:[%s185_s4] sm:$0xff] }
   0x5   :  { %81 = vperm.xlu1 %126, %v78_v6   ;;  %v76_v16 = vld [vmem:[%s186_s3] sm:$0xf] }
   0x6   :  { %67 = vmatpush.bf16.msra.mxu0 %v121_v3 }
   0x9   :  { %119 = vmatmul.msk.bf16.vlgmr.msra.gmra.mxu0 %vm56_vm0, %v123_v4 }
   0xa   :  { %36 = vperm.xlu0 %125, %v28_v5  }
  0x74   :  { %v32_v7 = vpop.permute.xlu0 %31 }
  0x77   :  { %v82_v17 = vpop.permute.xlu1 %81 }
  0x7c   :  { %v37_v10 = vpop.permute.xlu0 %36 }
  0x86   :  { %v69_v8 = vpop.f32.mrf.mxu0 }
  0x87   :  { %v70_v9 = vadd.f32 %v69_v8, %v32_v7 }
  0x89   :  { %v74_v13 = vmax.f32 %v70_v9, 0.0 }
  0x8e   :  { %v71_v11 = vpop.f32.mrf.mxu0 }
  0x8f   :  { %v72_v12 = vadd.f32 %v71_v11, %v37_v10 }
  0x91   :  { %v75_v14 = vmax.f32 %v72_v12, 0.0 }
  0x93   :  { %v77_v15 = vpack.c.bf16 %v75_v14, %v74_v13 }
  0x95   :  { %95 = vmatpush.bf16.msra.mxu1 %v77_v15 }
  0x98   :  { %120 = vmatmul.msk.bf16.vlgmr.msra.gmra.mxu1 %vm84_vm1, %v76_v16 }
 0x115   :  { %v97_v18 = vpop.f32.mrf.mxu1 }
 0x116   :  { %v98_v19 = vadd.f32 %v97_v18, %v82_v17 }
 0x118   :  { %102 = vst.msk [vmem:[%s187_s5] sm:$0xff] %vm101_vm2, %v98_v19 }
 0x11d   :  { %v99_v20 = vpop.f32.mrf.mxu1 }

</bundles_post_ra>
